<compile_context>
chip_gen: v5e
topology: v5e:2x2
jax: 0.10.0
libtpu: 0.0.40
codegen_flags: <defaults>
</compile_context>

<pallas_src>
import math

import jax
import jax.numpy as jnp
from jax.experimental import pallas as pl
from jax.experimental.pallas import tpu as pltpu


# ---------------------------------------------------------------------------
# Weight construction (mirrors GaussianSmoothing.__init__, dim=2)
# ---------------------------------------------------------------------------
def _gaussian_taps_1d(kernel_size, sigma):
    """Separable 1D factors (wy, wx) of the module's normalized 2D kernel.

    The module normalizes the 2D outer product by its total sum; since
    sum(outer(gy, gx)) == sum(gy) * sum(gx), normalizing each 1D vector by
    its own sum reproduces the same 2D kernel exactly.
    """
    if isinstance(kernel_size, (int, float)):
        kernel_size = [int(kernel_size)] * 2
    if isinstance(sigma, (int, float)):
        sigma = [float(sigma)] * 2

    taps = []
    for size, std in zip(kernel_size, sigma):
        mean = (size - 1) / 2.0
        grid = jnp.arange(size, dtype=jnp.float32)
        g = (1.0 / (std * math.sqrt(2.0 * math.pi))) * jnp.exp(
            -(((grid - mean) / std) ** 2) / 2.0
        )
        taps.append((g / jnp.sum(g)).astype(jnp.float32))
    return taps[0], taps[1]  # (KH,), (KW,)


def _gaussian_kernel_2d(channels, kernel_size, sigma):
    """Replicates the module's 2D weight (C, KH, KW) for the reference check."""
    if isinstance(kernel_size, (int, float)):
        kernel_size = [int(kernel_size)] * 2
    if isinstance(sigma, (int, float)):
        sigma = [float(sigma)] * 2

    mesh = jnp.meshgrid(
        *[jnp.arange(s, dtype=jnp.float32) for s in kernel_size], indexing="ij"
    )
    kernel = jnp.ones((), dtype=jnp.float32)
    for size, std, mgrid in zip(kernel_size, sigma, mesh):
        mean = (size - 1) / 2.0
        kernel = kernel * (
            1.0 / (std * math.sqrt(2 * math.pi))
            * jnp.exp(-(((mgrid - mean) / std) ** 2) / 2.0)
        )
    kernel = kernel / jnp.sum(kernel)
    return jnp.broadcast_to(kernel[None, :, :], (channels,) + kernel.shape).astype(
        jnp.float32
    )


# ---------------------------------------------------------------------------
# Pallas kernel: separable depthwise 2D conv on one (block_nc, H, W) tile
# ---------------------------------------------------------------------------
def _gaussian_separable_kernel(x_ref, wy_ref, wx_ref, o_ref):
    """o[b, i, j] = sum_ki wy[ki] * sum_kj wx[kj] * x[b, i+ki, j+kj]."""
    kh = wy_ref.shape[0]
    kw = wx_ref.shape[0]
    _, h, w = x_ref.shape
    oh = h - kh + 1
    ow = w - kw + 1

    # Single upfront cast; accumulate in f32 regardless of input dtype.
    x = x_ref[...].astype(jnp.float32)

    # Horizontal pass (lane axis): KW scalar-tap MACs from SMEM.
    tmp = wx_ref[0] * x[:, :, 0:ow]
    for kj in range(1, kw):
        tmp = tmp + wx_ref[kj] * x[:, :, kj:kj + ow]

    # Vertical pass (sublane axis): KH scalar-tap MACs from SMEM.
    acc = wy_ref[0] * tmp[:, 0:oh, :]
    for ki in range(1, kh):
        acc = acc + wy_ref[ki] * tmp[:, ki:ki + oh, :]

    o_ref[...] = acc.astype(o_ref.dtype)


def gaussian_smoothing(x, wy, wx, *, block_nc=None):
    """x: (N, C, H, W); wy: (KH,); wx: (KW,). Returns (N, C, H-KH+1, W-KW+1)."""
    n, c, h, w = x.shape
    kh = int(wy.shape[0])
    kw = int(wx.shape[0])
    oh, ow = h - kh + 1, w - kw + 1
    nc = n * c
    x2 = x.reshape(nc, h, w)

    if block_nc is None:
        # Keep each (double-buffered) input block <= ~8 MiB so the tile plan is
        # safe on v7x's 64 MiB VMEM while still amortizing per-grid-step cost.
        slice_bytes = h * w * x.dtype.itemsize
        budget = 8 * 1024 * 1024
        block_nc = max(1, min(nc, budget // max(1, slice_bytes)))
    while nc % block_nc:
        block_nc -= 1
    grid = (nc // block_nc,)

    out2 = pl.pallas_call(
        _gaussian_separable_kernel,
        out_shape=jax.ShapeDtypeStruct((nc, oh, ow), x.dtype),
        grid=grid,
        in_specs=[
            pl.BlockSpec((block_nc, h, w), lambda i: (i, 0, 0)),
            pl.BlockSpec(memory_space=pltpu.MemorySpace.SMEM),  # wy taps (scalars)
            pl.BlockSpec(memory_space=pltpu.MemorySpace.SMEM),  # wx taps (scalars)
        ],
        out_specs=pl.BlockSpec((block_nc, oh, ow), lambda i: (i, 0, 0)),
        compiler_params=pltpu.CompilerParams(
            dimension_semantics=("parallel",),
            vmem_limit_bytes=48 * 1024 * 1024,
        ),
    )(x2, wy, wx)
    return out2.reshape(n, c, oh, ow)


# ---------------------------------------------------------------------------
# Pure-JAX reference: depthwise (grouped) 2D conv, valid padding
# ---------------------------------------------------------------------------
def _reference(x, weight_2d):
    c = x.shape[1]
    w4 = weight_2d[:, None, :, :]  # (C, 1, KH, KW) == PyTorch OIHW
    return jax.lax.conv_general_dilated(
        x, w4,
        window_strides=(1, 1),
        padding="VALID",
        dimension_numbers=("NCHW", "OIHW", "NCHW"),
        feature_group_count=c,
    )


if __name__ == "__main__":
    N, C, H, W = 2, 4, 16, 16
    KSIZE, SIGMA = 5, 1.5

    key = jax.random.PRNGKey(0)
    x = jax.random.normal(key, (N, C, H, W), dtype=jnp.float32)

    wy, wx = _gaussian_taps_1d(KSIZE, SIGMA)          # separable 1D taps
    weight_2d = _gaussian_kernel_2d(C, KSIZE, SIGMA)  # module-style 2D weight

    out = jax.block_until_ready(gaussian_smoothing(x, wy, wx))
    ref = jax.block_until_ready(_reference(x, weight_2d))

    assert out.shape == (N, C, H - KSIZE + 1, W - KSIZE + 1), out.shape
    assert jnp.allclose(out, ref, atol=1e-5, rtol=1e-5), float(
        jnp.max(jnp.abs(out - ref))
    )
    print("KERNEL_OK")
</pallas_src>

<mosaic_0001>
module attributes {stable_mosaic.version = 11 : i64} {
  func.func @_gaussian_separable_kernel(%arg0: i32, %arg1: memref<8x16x16xf32, #tpu.memory_space<vmem>>, %arg2: memref<5xf32, #tpu.memory_space<smem>>, %arg3: memref<5xf32, #tpu.memory_space<smem>>, %arg4: memref<8x12x12xf32, #tpu.memory_space<vmem>>) attributes {dimension_semantics = [#tpu.dimension_semantics<parallel>], iteration_bounds = array<i64: 1>, scalar_prefetch = 0 : i64, scratch_operands = 0 : i64, tpu.core_type = #tpu.core_type<tc>, window_params = [{transform_indices = @transform_0, window_bounds = array<i64: 8, 16, 16>}, {transform_indices = @transform_1, window_bounds = array<i64: 5>}, {transform_indices = @transform_2, window_bounds = array<i64: 5>}, {transform_indices = @transform_3, window_bounds = array<i64: 8, 12, 12>}]} {
    %c0 = arith.constant 0 : index
    %c0_0 = arith.constant 0 : index
    %c0_1 = arith.constant 0 : index
    %0 = vector.load %arg1[%c0, %c0_0, %c0_1] : memref<8x16x16xf32, #tpu.memory_space<vmem>>, vector<8x16x16xf32>
    %c0_2 = arith.constant 0 : index
    %1 = memref.load %arg3[%c0_2] : memref<5xf32, #tpu.memory_space<smem>>
    %2 = vector.extract_strided_slice %0 {offsets = [0, 0, 0], sizes = [8, 16, 12], strides = [1, 1, 1]} : vector<8x16x16xf32> to vector<8x16x12xf32>
    %3 = vector.broadcast %1 : f32 to vector<8x16x12xf32>
    %4 = arith.mulf %3, %2 : vector<8x16x12xf32>
    %c1 = arith.constant 1 : index
    %5 = memref.load %arg3[%c1] : memref<5xf32, #tpu.memory_space<smem>>
    %6 = vector.extract_strided_slice %0 {offsets = [0, 0, 1], sizes = [8, 16, 12], strides = [1, 1, 1]} : vector<8x16x16xf32> to vector<8x16x12xf32>
    %7 = vector.broadcast %5 : f32 to vector<8x16x12xf32>
    %8 = arith.mulf %7, %6 : vector<8x16x12xf32>
    %9 = arith.addf %4, %8 : vector<8x16x12xf32>
    %c2 = arith.constant 2 : index
    %10 = memref.load %arg3[%c2] : memref<5xf32, #tpu.memory_space<smem>>
    %11 = vector.extract_strided_slice %0 {offsets = [0, 0, 2], sizes = [8, 16, 12], strides = [1, 1, 1]} : vector<8x16x16xf32> to vector<8x16x12xf32>
    %12 = vector.broadcast %10 : f32 to vector<8x16x12xf32>
    %13 = arith.mulf %12, %11 : vector<8x16x12xf32>
    %14 = arith.addf %9, %13 : vector<8x16x12xf32>
    %c3 = arith.constant 3 : index
    %15 = memref.load %arg3[%c3] : memref<5xf32, #tpu.memory_space<smem>>
    %16 = vector.extract_strided_slice %0 {offsets = [0, 0, 3], sizes = [8, 16, 12], strides = [1, 1, 1]} : vector<8x16x16xf32> to vector<8x16x12xf32>
    %17 = vector.broadcast %15 : f32 to vector<8x16x12xf32>
    %18 = arith.mulf %17, %16 : vector<8x16x12xf32>
    %19 = arith.addf %14, %18 : vector<8x16x12xf32>
    %c4 = arith.constant 4 : index
    %20 = memref.load %arg3[%c4] : memref<5xf32, #tpu.memory_space<smem>>
    %21 = vector.extract_strided_slice %0 {offsets = [0, 0, 4], sizes = [8, 16, 12], strides = [1, 1, 1]} : vector<8x16x16xf32> to vector<8x16x12xf32>
    %22 = vector.broadcast %20 : f32 to vector<8x16x12xf32>
    %23 = arith.mulf %22, %21 : vector<8x16x12xf32>
    %24 = arith.addf %19, %23 : vector<8x16x12xf32>
    %c0_3 = arith.constant 0 : index
    %25 = memref.load %arg2[%c0_3] : memref<5xf32, #tpu.memory_space<smem>>
    %26 = vector.extract_strided_slice %24 {offsets = [0, 0, 0], sizes = [8, 12, 12], strides = [1, 1, 1]} : vector<8x16x12xf32> to vector<8x12x12xf32>
    %27 = vector.broadcast %25 : f32 to vector<8x12x12xf32>
    %28 = arith.mulf %27, %26 : vector<8x12x12xf32>
    %c1_4 = arith.constant 1 : index
    %29 = memref.load %arg2[%c1_4] : memref<5xf32, #tpu.memory_space<smem>>
    %30 = vector.extract_strided_slice %24 {offsets = [0, 1, 0], sizes = [8, 12, 12], strides = [1, 1, 1]} : vector<8x16x12xf32> to vector<8x12x12xf32>
    %31 = vector.broadcast %29 : f32 to vector<8x12x12xf32>
    %32 = arith.mulf %31, %30 : vector<8x12x12xf32>
    %33 = arith.addf %28, %32 : vector<8x12x12xf32>
    %c2_5 = arith.constant 2 : index
    %34 = memref.load %arg2[%c2_5] : memref<5xf32, #tpu.memory_space<smem>>
    %35 = vector.extract_strided_slice %24 {offsets = [0, 2, 0], sizes = [8, 12, 12], strides = [1, 1, 1]} : vector<8x16x12xf32> to vector<8x12x12xf32>
    %36 = vector.broadcast %34 : f32 to vector<8x12x12xf32>
    %37 = arith.mulf %36, %35 : vector<8x12x12xf32>
    %38 = arith.addf %33, %37 : vector<8x12x12xf32>
    %c3_6 = arith.constant 3 : index
    %39 = memref.load %arg2[%c3_6] : memref<5xf32, #tpu.memory_space<smem>>
    %40 = vector.extract_strided_slice %24 {offsets = [0, 3, 0], sizes = [8, 12, 12], strides = [1, 1, 1]} : vector<8x16x12xf32> to vector<8x12x12xf32>
    %41 = vector.broadcast %39 : f32 to vector<8x12x12xf32>
    %42 = arith.mulf %41, %40 : vector<8x12x12xf32>
    %43 = arith.addf %38, %42 : vector<8x12x12xf32>
    %c4_7 = arith.constant 4 : index
    %44 = memref.load %arg2[%c4_7] : memref<5xf32, #tpu.memory_space<smem>>
    %45 = vector.extract_strided_slice %24 {offsets = [0, 4, 0], sizes = [8, 12, 12], strides = [1, 1, 1]} : vector<8x16x12xf32> to vector<8x12x12xf32>
    %46 = vector.broadcast %44 : f32 to vector<8x12x12xf32>
    %47 = arith.mulf %46, %45 : vector<8x12x12xf32>
    %48 = arith.addf %43, %47 : vector<8x12x12xf32>
    %c0_8 = arith.constant 0 : index
    %c0_9 = arith.constant 0 : index
    %c0_10 = arith.constant 0 : index
    %49 = vector.load %arg4[%c0_8, %c0_9, %c0_10] : memref<8x12x12xf32, #tpu.memory_space<vmem>>, vector<8x12x12xf32>
    tpu.vector_store %arg4[%c0_8, %c0_9, %c0_10], %48 {strides = array<i32>} : memref<8x12x12xf32, #tpu.memory_space<vmem>>, vector<8x12x12xf32>,
    return
  }
  func.func @transform_0(%arg0: i32) -> (i32, i32, i32) {
    %c0_i32 = arith.constant 0 : i32
    %c0_i32_0 = arith.constant 0 : i32
    %c0_i32_1 = arith.constant 0 : i32
    return %arg0, %c0_i32, %c0_i32_0 : i32, i32, i32
  }
  func.func @transform_1(%arg0: i32) -> i32 {
    %c0_i32 = arith.constant 0 : i32
    %c0_i32_0 = arith.constant 0 : i32
    return %c0_i32 : i32
  }
  func.func @transform_2(%arg0: i32) -> i32 {
    %c0_i32 = arith.constant 0 : i32
    %c0_i32_0 = arith.constant 0 : i32
    return %c0_i32 : i32
  }
  func.func @transform_3(%arg0: i32) -> (i32, i32, i32) {
    %c0_i32 = arith.constant 0 : i32
    %c0_i32_0 = arith.constant 0 : i32
    %c0_i32_1 = arith.constant 0 : i32
    return %arg0, %c0_i32, %c0_i32_0 : i32, i32, i32
  }
}

</mosaic_0001>

<bundles_post_ra>
// kernel: tpu_custom_call.1
= control target key start
LH: loop header
LB: loop body
LE: loop exit
PB: predicated region body
PF: predicated region fallthrough
CT: control target
= control target key end

     0   :  { %8 = vsyncpa [#allocation3], 0  ;;  %s1590_s0 = inlined_call_operand.hbm [shape: f32[8,16,16], index: 0, kind: input, shape index: {}]   ;;  %s1591_s1 = inlined_call_operand.hbm [shape: f32[5], index: 1, kind: input, shape index: {}]   ;;  %s1592_s2 = inlined_call_operand.vmem [shape: f32[5], index: 2, kind: input, shape index: {}]   ;;  %s1593_s3 = inlined_call_operand.vmem [shape: f32[8,12,12], index: 3, kind: output, shape index: {}]  }
   0x1   :  { %9 = vsyncpa [#allocation4], 0  ;;  %s15_s14 = sshll.u32 %s1590_s0, 4  ;;  %s16_s14 = int_to_ptr.hbm [resolvable:$true] %s15_s14 }
   0x2   :  { %10 = vsyncpa [#allocation5], 0  ;;  %s959_s15 = smov [#allocation2]   ;;  %s29_s19 = sshll.u32 %s1591_s1, 4  ;;  %s30_s19 = int_to_ptr.hbm [resolvable:$true] %s29_s19 }
   0x3   :  { %s17_s16 = sshll.u32 %s959_s15, 4  ;;  %s960_s20 = smov 128   ;;  %s18_s16 = int_to_ptr.vmem [resolvable:$true] %s17_s16 }
   0x4   :  { %s961_s21 = smov 8   ;;  %s962_s22 = smov [#allocation6]  }
   0x5   :  { %23 = dma.hbm_to_vmem [thread:$0]  %s16_s14, 2048, %s18_s16, [#allocation3], %s960_s20, %s960_s20, %s961_s21  }
   0x6   :  { %32 = dma.hbm_to_smem %s30_s19, 16, %s962_s22, [#allocation4]  }
   0x7   :  { %s38_s25 = sshll.u32 %s1592_s2, 4  ;;  %s963_s0 = smov [#allocation7]   ;;  %s39_s25 = int_to_ptr.vmem [resolvable:$true] %s38_s25 }
   0x8   :  { %41 = dma.vmem_to_smem %s39_s25, 16, %s963_s0, [#allocation5]  }
   0x9   :  { %953 = dma.done.wait [#allocation3], 2048  }
   0xa   :  { %954 = vsyncadd [#allocation3], 4294965248 }
   0xb   :  { %955 = dma.done.wait [#allocation4], 16  }
   0xc   :  { %956 = vsyncadd [#allocation4], 4294967280 }
   0xd   :  { %957 = dma.done.wait [#allocation5], 16  }
   0xe   :  { %958 = vsyncadd [#allocation5], 4294967280 }
   0xf   :  { %54 = sfence }
  0x10   :  { %s888_s1 = sld [smem:[#allocation7 + $0x1]]  ;;  %v997_v0 = vld [vmem:[#allocation2 + $0x20] sm:$0xff]  ;;  %v999_v1 = vld [vmem:[#allocation2 + $0x10] sm:$0xff]  ;;  %s964_s2 = smov 127   ;;  %v1009_v7 = vld [vmem:[#allocation2 + $0x28] sm:$0xff]  ;;  %vm865_vm0 = vcmask 93184  }
  0x11   :  { %v1001_v2 = vld [vmem:[#allocation2] sm:$0xff]  ;;  %v1011_v8 = vld [vmem:[#allocation2 + $0x18] sm:$0xff]  ;;  %v1013_v9 = vld [vmem:[#allocation2 + $0x8] sm:$0xff]  ;;  %s889_s26 = sld [smem:[#allocation7 + $0x2]]  ;;  %s965_s27 = smov 126   ;;  %vm533_vm1 = vcmask 1046528  }
  0x12   :  { %v1021_v13 = vld [vmem:[#allocation2 + $0x40] sm:$0xff]  ;;  %v1023_v14 = vld [vmem:[#allocation2 + $0x38] sm:$0xff]  ;;  %v1025_v15 = vld [vmem:[#allocation2 + $0x30] sm:$0xff]  ;;  %s890_s28 = sld [smem:[#allocation7 + $0x3]]  ;;  %s966_s29 = smov 125   ;;  %vm624_vm2 = vcmask 1045504  }
  0x13   :  { %v1033_v19 = vld [vmem:[#allocation2 + $0x58] sm:$0xff]  ;;  %v1035_v20 = vld [vmem:[#allocation2 + $0x50] sm:$0xff]  ;;  %v1037_v21 = vld [vmem:[#allocation2 + $0x48] sm:$0xff]  ;;  %s891_s30 = sld [smem:[#allocation7 + $0x4]]  ;;  %s967_s5 = smov 124   ;;  %vm715_vm3 = vcmask 1044480  }
  0x14   :  { %v1045_v25 = vld [vmem:[#allocation2 + $0x70] sm:$0xff]  ;;  %v1047_v26 = vld [vmem:[#allocation2 + $0x68] sm:$0xff]  ;;  %v1049_v27 = vld [vmem:[#allocation2 + $0x60] sm:$0xff]  ;;  %s71_s4 = sld [smem:[#allocation7]]  ;;  %vm806_vm4 = vcmask 1043456   ;;  %vm863_vm5 = vcmask 97280  }
  0x15   :  { %v1057_v32 = vld [vmem:[#allocation2 + $0x78] sm:$0xff]  ;;  %s892_s6 = sld [smem:[#allocation6 + $0x1]] }
  0x16   :  { %v90_v3 = vstv %s888_s1  ;;  %s893_s7 = sld [smem:[#allocation6 + $0x2]] }
  0x17   :  { %v95_v4 = vmul.f32 %v90_v3, %v997_v0  ;;  %v93_v5 = vmul.f32 %v90_v3, %v999_v1  ;;  %v91_v6 = vmul.f32 %v90_v3, %v1001_v2  ;;  %v96_v10 = vmul.f32 %v90_v3, %v1009_v7  ;;  %s481_s8 = sld [smem:[#allocation6]] }
  0x18   :  { %v94_v11 = vmul.f32 %v90_v3, %v1011_v8  ;;  %v92_v12 = vmul.f32 %v90_v3, %v1013_v9  ;;  %v99_v16 = vmul.f32 %v90_v3, %v1021_v13  ;;  %v98_v17 = vmul.f32 %v90_v3, %v1023_v14  ;;  %s894_s9 = sld [smem:[#allocation6 + $0x3]] }
  0x19   :  { %131 = vrot.lane.b32.xlu2 %v95_v4, %s964_s2  ;;  %127 = vrot.lane.b32.xlu1 %v93_v5, %s964_s2  ;;  %v97_v18 = vmul.f32 %v90_v3, %v1025_v15  ;;  %v102_v22 = vmul.f32 %v90_v3, %v1033_v19  ;;  %v101_v23 = vmul.f32 %v90_v3, %v1035_v20  ;;  %v188_v31 = vstv %s889_s26  ;;  %s895_s10 = sld [smem:[#allocation6 + $0x4]] }
  0x1a   :  { %123 = vrot.lane.b32.xlu0 %v91_v6, %s964_s2  ;;  %v100_v24 = vmul.f32 %v90_v3, %v1037_v21  ;;  %v105_v28 = vmul.f32 %v90_v3, %v1045_v25  ;;  %v104_v29 = vmul.f32 %v90_v3, %v1047_v26  ;;  %v103_v30 = vmul.f32 %v90_v3, %v1049_v27 }
  0x1b   :  { %v190_v33 = vmul.f32 %v188_v31, %v1013_v9  ;;  %v189_v34 = vmul.f32 %v188_v31, %v1001_v2  ;;  %v106_v35 = vmul.f32 %v90_v3, %v1057_v32  ;;  %v193_v36 = vmul.f32 %v188_v31, %v997_v0 }
  0x1c   :  { %v192_v37 = vmul.f32 %v188_v31, %v1011_v8  ;;  %v191_v38 = vmul.f32 %v188_v31, %v999_v1  ;;  %v196_v39 = vmul.f32 %v188_v31, %v1023_v14  ;;  %v195_v40 = vmul.f32 %v188_v31, %v1025_v15 }
  0x1d   :  { %v194_v41 = vmul.f32 %v188_v31, %v1009_v7  ;;  %v199_v42 = vmul.f32 %v188_v31, %v1035_v20  ;;  %v198_v43 = vmul.f32 %v188_v31, %v1037_v21  ;;  %v197_v44 = vmul.f32 %v188_v31, %v1021_v13 }
  0x1e   :  { %v202_v45 = vmul.f32 %v188_v31, %v1047_v26  ;;  %v201_v46 = vmul.f32 %v188_v31, %v1049_v27  ;;  %v200_v47 = vmul.f32 %v188_v31, %v1033_v19  ;;  %v286_v48 = vstv %s890_s28 }
  0x1f   :  { %v287_v49 = vmul.f32 %v286_v48, %v1001_v2  ;;  %v204_v50 = vmul.f32 %v188_v31, %v1057_v32  ;;  %v203_v51 = vmul.f32 %v188_v31, %v1045_v25  ;;  %v290_v52 = vmul.f32 %v286_v48, %v1011_v8 }
  0x20   :  { %v289_v53 = vmul.f32 %v286_v48, %v999_v1  ;;  %v288_v54 = vmul.f32 %v286_v48, %v1013_v9  ;;  %v293_v56 = vmul.f32 %v286_v48, %v1025_v15  ;;  %v292_v57 = vmul.f32 %v286_v48, %v1009_v7 }
  0x21   :  { %133 = vrot.lane.b32.xlu2 %v96_v10, %s964_s2  ;;  %129 = vrot.lane.b32.xlu1 %v94_v11, %s964_s2  ;;  %v291_v58 = vmul.f32 %v286_v48, %v997_v0  ;;  %v296_v60 = vmul.f32 %v286_v48, %v1037_v21  ;;  %v295_v61 = vmul.f32 %v286_v48, %v1021_v13 }
  0x22   :  { %125 = vrot.lane.b32.xlu0 %v92_v12, %s964_s2  ;;  %v294_v62 = vmul.f32 %v286_v48, %v1023_v14  ;;  %v299_v3 = vmul.f32 %v286_v48, %v1049_v27  ;;  %v298_v4 = vmul.f32 %v286_v48, %v1033_v19  ;;  %v297_v5 = vmul.f32 %v286_v48, %v1035_v20 }
  0x23   :  { %v302_v12 = vmul.f32 %v286_v48, %v1057_v32 }
  0x29   :  { %139 = vrot.lane.b32.xlu2 %v99_v16, %s964_s2  ;;  %137 = vrot.lane.b32.xlu1 %v98_v17, %s964_s2  ;;  %v301_v16 = vmul.f32 %v286_v48, %v1045_v25  ;;  %v300_v17 = vmul.f32 %v286_v48, %v1047_v26 }
  0x2a   :  { %135 = vrot.lane.b32.xlu0 %v97_v18, %s964_s2  ;;  %v1133_v18 = vstv %s891_s30 }
  0x31   :  { %145 = vrot.lane.b32.xlu2 %v102_v22, %s964_s2  ;;  %143 = vrot.lane.b32.xlu1 %v101_v23, %s964_s2 }
  0x32   :  { %141 = vrot.lane.b32.xlu0 %v100_v24, %s964_s2 }
  0x39   :  { %151 = vrot.lane.b32.xlu2 %v105_v28, %s964_s2  ;;  %149 = vrot.lane.b32.xlu1 %v104_v29, %s964_s2  ;;  %v1139_v28 = vstv %s71_s4  ;;  %v387_v29 = vmul.f32 %v1133_v18, %v999_v1 }
  0x3a   :  { %147 = vrot.lane.b32.xlu0 %v103_v30, %s964_s2  ;;  %v386_v30 = vmul.f32 %v1133_v18, %v1013_v9  ;;  %v74_v31 = vmul.f32 %v1139_v28, %v1013_v9  ;;  %v389_v9 = vmul.f32 %v1133_v18, %v997_v0  ;;  %v80_v48 = vmul.f32 %v1139_v28, %v1023_v14 }
  0x41   :  { %223 = vrot.lane.b32.xlu2 %v190_v33, %s965_s27  ;;  %221 = vrot.lane.b32.xlu1 %v189_v34, %s965_s27  ;;  %v385_v33 = vmul.f32 %v1133_v18, %v1001_v2 }
  0x42   :  { %153 = vrot.lane.b32.xlu0 %v106_v35, %s964_s2 }
  0x49   :  { %229 = vrot.lane.b32.xlu2 %v193_v36, %s965_s27  ;;  %227 = vrot.lane.b32.xlu1 %v192_v37, %s965_s27 }
  0x4a   :  { %225 = vrot.lane.b32.xlu0 %v191_v38, %s965_s27 }
  0x51   :  { %235 = vrot.lane.b32.xlu2 %v196_v39, %s965_s27  ;;  %233 = vrot.lane.b32.xlu1 %v195_v40, %s965_s27  ;;  %v390_v39 = vmul.f32 %v1133_v18, %v1009_v7  ;;  %v77_v40 = vmul.f32 %v1139_v28, %v997_v0  ;;  %v392_v0 = vmul.f32 %v1133_v18, %v1023_v14 }
  0x52   :  { %231 = vrot.lane.b32.xlu0 %v194_v41, %s965_s27  ;;  %v388_v41 = vmul.f32 %v1133_v18, %v1011_v8  ;;  %v395_v14 = vmul.f32 %v1133_v18, %v1035_v20 }
  0x59   :  { %241 = vrot.lane.b32.xlu2 %v199_v42, %s965_s27  ;;  %239 = vrot.lane.b32.xlu1 %v198_v43, %s965_s27 }
  0x5a   :  { %237 = vrot.lane.b32.xlu0 %v197_v44, %s965_s27 }
  0x61   :  { %247 = vrot.lane.b32.xlu2 %v202_v45, %s965_s27  ;;  %245 = vrot.lane.b32.xlu1 %v201_v46, %s965_s27 }
  0x62   :  { %243 = vrot.lane.b32.xlu0 %v200_v47, %s965_s27  ;;  %v393_v47 = vmul.f32 %v1133_v18, %v1021_v13 }
  0x69   :  { %319 = vrot.lane.b32.xlu2 %v287_v49, %s966_s29  ;;  %251 = vrot.lane.b32.xlu1 %v204_v50, %s965_s27  ;;  %v391_v49 = vmul.f32 %v1133_v18, %v1025_v15 }
  0x6a   :  { %249 = vrot.lane.b32.xlu0 %v203_v51, %s965_s27 }
  0x71   :  { %325 = vrot.lane.b32.xlu2 %v290_v52, %s966_s29  ;;  %323 = vrot.lane.b32.xlu1 %v289_v53, %s966_s29 }
  0x72   :  { %321 = vrot.lane.b32.xlu0 %v288_v54, %s966_s29 }
  0x73   :  { %v132_v55 = vpop.permute.xlu2 %131 }
  0x74   :  { %v175_v42 = vadd.f32 %v132_v55, %v77_v40  ;;  %v396_v55 = vmul.f32 %v1133_v18, %v1033_v19 }
  0x79   :  { %331 = vrot.lane.b32.xlu2 %v293_v56, %s966_s29  ;;  %329 = vrot.lane.b32.xlu1 %v292_v57, %s966_s29  ;;  %v73_v56 = vmul.f32 %v1139_v28, %v1001_v2  ;;  %v83_v57 = vmul.f32 %v1139_v28, %v1035_v20  ;;  %v399_v20 = vmul.f32 %v1133_v18, %v1045_v25 }
  0x7a   :  { %327 = vrot.lane.b32.xlu0 %v291_v58, %s966_s29  ;;  %v394_v58 = vmul.f32 %v1133_v18, %v1037_v21 }
  0x7b   :  { %v1107_v59 = vpop.permute.xlu2 %133 }
  0x81   :  { %337 = vrot.lane.b32.xlu2 %v296_v60, %s966_s29  ;;  %335 = vrot.lane.b32.xlu1 %v295_v61, %s966_s29 }
  0x82   :  { %333 = vrot.lane.b32.xlu0 %v294_v62, %s966_s29 }
  0x83   :  { %v1115_v63 = vpop.permute.xlu2 %139 }
  0x89   :  { %343 = vrot.lane.b32.xlu2 %v299_v3, %s966_s29  ;;  %341 = vrot.lane.b32.xlu1 %v298_v4, %s966_s29 }
  0x8a   :  { %339 = vrot.lane.b32.xlu0 %v297_v5, %s966_s29 }
  0x8b   :  { %v1123_v6 = vpop.permute.xlu2 %145  ;;  %v1125_v10 = vpop.permute.xlu1 %127 }
  0x8c   :  { %v124_v11 = vpop.permute.xlu0 %123 }
  0x8d   :  { %v171_v60 = vadd.f32 %v124_v11, %v73_v56  ;;  %v86_v11 = vmul.f32 %v1139_v28, %v1047_v26 }
  0x91   :  { %349 = vrot.lane.b32.xlu2 %v302_v12, %s966_s29  ;;  %347 = vrot.lane.b32.xlu1 %v301_v16, %s966_s29  ;;  %v398_v12 = vmul.f32 %v1133_v18, %v1047_v26  ;;  %v76_v16 = vmul.f32 %v1139_v28, %v1011_v8 }
  0x92   :  { %345 = vrot.lane.b32.xlu0 %v300_v17, %s966_s29  ;;  %v397_v17 = vmul.f32 %v1133_v18, %v1049_v27 }
  0x93   :  { %v1135_v22 = vpop.permute.xlu2 %151  ;;  %v1137_v23 = vpop.permute.xlu1 %129 }
  0x94   :  { %v126_v24 = vpop.permute.xlu0 %125 }
  0x95   :  { %v172_v34 = vadd.f32 %v126_v24, %v74_v31  ;;  %v75_v24 = vmul.f32 %v1139_v28, %v999_v1  ;;  %v79_v1 = vmul.f32 %v1139_v28, %v1025_v15 }
  0x97   :  { %v173_v8 = vadd.f32 %v1125_v10, %v75_v24 }
  0x99   :  { %421 = vrot.lane.b32.xlu2 %v387_v29, %s967_s5  ;;  %419 = vrot.lane.b32.xlu1 %v386_v30, %s967_s5  ;;  %v174_v29 = vadd.f32 %v1137_v23, %v76_v16 }
  0x9a   :  { %417 = vrot.lane.b32.xlu0 %v385_v33, %s967_s5 }
  0x9b   :  { %v138_v35 = vpop.permute.xlu1 %137  ;;  %v224_v36 = vpop.permute.xlu2 %223 }
  0x9c   :  { %v1152_v37 = vadd.f32 %v224_v36, %v172_v34  ;;  %v136_v38 = vpop.permute.xlu0 %135  ;;  %v178_v50 = vadd.f32 %v138_v35, %v80_v48 }
  0x9d   :  { %v177_v23 = vadd.f32 %v136_v38, %v79_v1 }
  0xa1   :  { %427 = vrot.lane.b32.xlu2 %v390_v39, %s967_s5  ;;  %425 = vrot.lane.b32.xlu1 %v389_v9, %s967_s5  ;;  %v400_v39 = vmul.f32 %v1133_v18, %v1057_v32 }
  0xa2   :  { %423 = vrot.lane.b32.xlu0 %v388_v41, %s967_s5 }
  0xa3   :  { %v144_v43 = vpop.permute.xlu1 %143  ;;  %v230_v44 = vpop.permute.xlu2 %229 }
  0xa4   :  { %v1165_v45 = vadd.f32 %v230_v44, %v175_v42  ;;  %v142_v46 = vpop.permute.xlu0 %141  ;;  %v181_v61 = vadd.f32 %v144_v43, %v83_v57  ;;  %v82_v43 = vmul.f32 %v1139_v28, %v1037_v21  ;;  %v81_v44 = vmul.f32 %v1139_v28, %v1021_v13 }
  0xa6   :  { %v179_v15 = vadd.f32 %v1115_v63, %v81_v44  ;;  %v88_v63 = vmul.f32 %v1139_v28, %v1057_v32 }
  0xa9   :  { %433 = vrot.lane.b32.xlu2 %v393_v47, %s967_s5  ;;  %431 = vrot.lane.b32.xlu1 %v392_v0, %s967_s5  ;;  %v180_v47 = vadd.f32 %v142_v46, %v82_v43  ;;  %v87_v46 = vmul.f32 %v1139_v28, %v1045_v25 }
  0xaa   :  { %429 = vrot.lane.b32.xlu0 %v391_v49, %s967_s5 }
  0xab   :  { %v150_v51 = vpop.permute.xlu1 %149  ;;  %v236_v52 = vpop.permute.xlu2 %235 }
  0xac   :  { %v1178_v53 = vadd.f32 %v236_v52, %v178_v50  ;;  %v148_v54 = vpop.permute.xlu0 %147  ;;  %v184_v30 = vadd.f32 %v150_v51, %v86_v11  ;;  %v85_v51 = vmul.f32 %v1139_v28, %v1049_v27 }
  0xae   :  { %v183_v52 = vadd.f32 %v148_v54, %v85_v51 }
  0xb1   :  { %439 = vrot.lane.b32.xlu2 %v396_v55, %s967_s5  ;;  %437 = vrot.lane.b32.xlu1 %v395_v14, %s967_s5 }
  0xb2   :  { %435 = vrot.lane.b32.xlu0 %v394_v58, %s967_s5  ;;  %v185_v58 = vadd.f32 %v1135_v22, %v87_v46  ;;  %v78_v22 = vmul.f32 %v1139_v28, %v1009_v7 }
  0xb3   :  { %v242_v62 = vpop.permute.xlu2 %241  ;;  %v222_v3 = vpop.permute.xlu1 %221 }
  0xb4   :  { %v1193_v4 = vadd.f32 %v242_v62, %v181_v61  ;;  %v269_v5 = vadd.f32 %v222_v3, %v171_v60  ;;  %v154_v2 = vpop.permute.xlu0 %153 }
  0xb5   :  { %v186_v57 = vadd.f32 %v154_v2, %v88_v63 }
  0xb9   :  { %445 = vrot.lane.b32.xlu2 %v399_v20, %s967_s5  ;;  %443 = vrot.lane.b32.xlu1 %v398_v12, %s967_s5 }
  0xba   :  { %441 = vrot.lane.b32.xlu0 %v397_v17, %s967_s5 }
  0xbb   :  { %v248_v31 = vpop.permute.xlu2 %247  ;;  %v228_v33 = vpop.permute.xlu1 %227 }
  0xbc   :  { %v1212_v26 = vadd.f32 %v248_v31, %v184_v30  ;;  %v272_v34 = vadd.f32 %v228_v33, %v174_v29  ;;  %v226_v35 = vpop.permute.xlu0 %225  ;;  %v176_v30 = vadd.f32 %v1107_v59, %v78_v22  ;;  %v1262_v59 = vstv %s481_s8 }
  0xbd   :  { %v1214_v36 = vadd.f32 %v226_v35, %v173_v8 }
  0xc2   :  { %447 = vrot.lane.b32.xlu0 %v400_v39, %s967_s5  ;;  %v1252_v39 = vstv %s892_s6 }
  0xc3   :  { %v320_v9 = vpop.permute.xlu2 %319  ;;  %v234_v40 = vpop.permute.xlu1 %233 }
  0xc4   :  { %v1221_v10 = vadd.f32 %v320_v9, %v269_v5  ;;  %v275_v41 = vadd.f32 %v234_v40, %v177_v23  ;;  %v232_v42 = vpop.permute.xlu0 %231  ;;  %v1254_v23 = vstv %s893_s7  ;;  %v1264_v40 = vstv %s894_s9 }
  0xc5   :  { %v274_v8 = vadd.f32 %v232_v42, %v176_v30 }
  0xcb   :  { %v326_v0 = vpop.permute.xlu2 %325  ;;  %v240_v18 = vpop.permute.xlu1 %239 }
  0xcc   :  { %v1228_v38 = vadd.f32 %v326_v0, %v272_v34  ;;  %v278_v48 = vadd.f32 %v240_v18, %v180_v47  ;;  %v238_v49 = vpop.permute.xlu0 %237  ;;  %v84_v47 = vmul.f32 %v1139_v28, %v1033_v19 }
  0xcd   :  { %v277_v50 = vadd.f32 %v238_v49, %v179_v15  ;;  %v1274_v15 = vstv %s895_s10 }
  0xce   :  { %v182_v28 = vadd.f32 %v1123_v6, %v84_v47 }
  0xd3   :  { %v332_v55 = vpop.permute.xlu2 %331  ;;  %v246_v14 = vpop.permute.xlu1 %245 }
  0xd4   :  { %v1232_v21 = vadd.f32 %v332_v55, %v275_v41  ;;  %v281_v56 = vadd.f32 %v246_v14, %v183_v52  ;;  %v1234_v13 = vpop.permute.xlu0 %243 }
  0xdb   :  { %v338_v60 = vpop.permute.xlu2 %337  ;;  %v252_v61 = vpop.permute.xlu1 %251 }
  0xdc   :  { %v1241_v27 = vadd.f32 %v338_v60, %v278_v48  ;;  %v284_v54 = vadd.f32 %v252_v61, %v186_v57  ;;  %v250_v62 = vpop.permute.xlu0 %249 }
  0xdd   :  { %v1243_v3 = vadd.f32 %v250_v62, %v185_v58  ;;  %v280_v58 = vadd.f32 %v1234_v13, %v182_v28 }
  0xe3   :  { %v344_v5 = vpop.permute.xlu2 %343  ;;  %v324_v20 = vpop.permute.xlu1 %323 }
  0xe4   :  { %v1245_v12 = vadd.f32 %v344_v5, %v281_v56  ;;  %v322_v16 = vpop.permute.xlu0 %321  ;;  %v369_v41 = vadd.f32 %v324_v20, %v1214_v36 }
  0xe5   :  { %v368_v6 = vadd.f32 %v322_v16, %v1152_v37 }
  0xeb   :  { %v350_v32 = vpop.permute.xlu2 %349  ;;  %v330_v11 = vpop.permute.xlu1 %329 }
  0xec   :  { %v1247_v17 = vadd.f32 %v350_v32, %v284_v54  ;;  %v328_v25 = vpop.permute.xlu0 %327  ;;  %v372_v31 = vadd.f32 %v330_v11, %v274_v8 }
  0xed   :  { %v1304_v54 = vadd.f32 %v328_v25, %v1165_v45 }
  0xf3   :  { %v422_v2 = vpop.permute.xlu2 %421  ;;  %v336_v24 = vpop.permute.xlu1 %335 }
  0xf4   :  { %v334_v29 = vpop.permute.xlu0 %333  ;;  %v467_v0 = vadd.f32 %v422_v2, %v369_v41  ;;  %v375_v49 = vadd.f32 %v336_v24, %v277_v50 }
  0xf5   :  { %v1307_v62 = vadd.f32 %v334_v29, %v1178_v53 }
  0xf6   :  { %v1287_v63 = vmul.f32 %v1252_v39, %v467_v0  ;;  %v1290_v46 = vmul.f32 %v1254_v23, %v467_v0  ;;  %v1297_v60 = vmul.f32 %v1264_v40, %v467_v0  ;;  %v1300_v61 = vmul.f32 %v1274_v15, %v467_v0 }
  0xf7   :  { %v1324_v45 = vmul.f32 %v1262_v59, %v467_v0 }
  0xfb   :  { %v428_v33 = vpop.permute.xlu2 %427  ;;  %v342_v34 = vpop.permute.xlu1 %341 }
  0xfc   :  { %v470_v35 = vadd.f32 %v428_v33, %v372_v31  ;;  %v340_v1 = vpop.permute.xlu0 %339  ;;  %v378_v11 = vadd.f32 %v342_v34, %v280_v58 }
  0xfd   :  { %v1335_v2 = vadd.f32 %v340_v1, %v1193_v4 }
  0xfe   :  { %v1257_v7 = vmul.f32 %v1252_v39, %v470_v35  ;;  %v1260_v9 = vmul.f32 %v1254_v23, %v470_v35  ;;  %v488_v42 = vmul.f32 %v1262_v59, %v470_v35  ;;  %v1270_v44 = vmul.f32 %v1264_v40, %v470_v35 }
  0xff   :  { %v1280_v36 = vmul.f32 %v1274_v15, %v470_v35 }
 0x100   :  { %v541_v43 = vrot.slane %v1257_v7, 1  ;;  %v632_v48 = vrot.slane %v1260_v9, 2  ;;  %v723_v14 = vrot.slane %v1270_v44, 3 }
 0x101   :  { %v1595_v57 = vrot.slane %v1280_v36, 4 }
 0x102   :  { %v579_v18 = vadd.f32 %v541_v43, %v488_v42 }
 0x103   :  { %v434_v51 = vpop.permute.xlu2 %433  ;;  %v348_v52 = vpop.permute.xlu1 %347 }
 0x104   :  { %v670_v55 = vadd.f32 %v632_v48, %v579_v18  ;;  %v346_v19 = vpop.permute.xlu0 %345  ;;  %v473_v56 = vadd.f32 %v434_v51, %v375_v49  ;;  %v381_v24 = vadd.f32 %v348_v52, %v1243_v3 }
 0x105   :  { %v1342_v31 = vadd.f32 %v346_v19, %v1212_v26 }
 0x106   :  { %v761_v50 = vadd.f32 %v723_v14, %v670_v55  ;;  %v1312_v13 = vmul.f32 %v1252_v39, %v473_v56  ;;  %v1315_v20 = vmul.f32 %v1254_v23, %v473_v56  ;;  %v1318_v32 = vmul.f32 %v1264_v40, %v473_v56 }
 0x107   :  { %v1321_v37 = vmul.f32 %v1274_v15, %v473_v56  ;;  %v1339_v8 = vmul.f32 %v1262_v59, %v473_v56 }
 0x108   :  { %v852_v5 = vadd.f32 %v1595_v57, %v761_v50 }
 0x10a   :  { %870 = vst.msk [vmem:[%s1593_s3 + $0x28] sm:$0xf] %vm865_vm0, %v852_v5 }
 0x10b   :  { %v440_v29 = vpop.permute.xlu2 %439  ;;  %v420_v30 = vpop.permute.xlu1 %419 }
 0x10c   :  { %v476_v33 = vadd.f32 %v440_v29, %v378_v11  ;;  %v466_v34 = vadd.f32 %v420_v30, %v368_v6  ;;  %v418_v35 = vpop.permute.xlu0 %417 }
 0x10d   :  { %v465_v0 = vadd.f32 %v418_v35, %v1221_v10 }
 0x10e   :  { %v1349_v42 = vmul.f32 %v1252_v39, %v476_v33  ;;  %v1352_v26 = vmul.f32 %v1254_v23, %v476_v33  ;;  %v1355_v47 = vmul.f32 %v1264_v40, %v476_v33  ;;  %v494_v18 = vmul.f32 %v1262_v59, %v476_v33 }
 0x10f   :  { %v1360_v49 = vmul.f32 %v1274_v15, %v476_v33  ;;  %v502_v51 = vmul.f32 %v1252_v39, %v466_v34  ;;  %v593_v52 = vmul.f32 %v1254_v23, %v466_v34  ;;  %v484_v28 = vmul.f32 %v1262_v59, %v466_v34 }
 0x110   :  { %v1594_v55 = vrot.slane %v1349_v42, 1  ;;  %v1596_v19 = vrot.slane %v1352_v26, 2  ;;  %v684_v56 = vmul.f32 %v1264_v40, %v466_v34  ;;  %v732_v50 = vrot.slane %v1355_v47, 3 }
 0x111   :  { %v823_v10 = vrot.slane %v1360_v49, 4  ;;  %v535_v58 = vrot.slane %v502_v51, 1  ;;  %v775_v6 = vmul.f32 %v1274_v15, %v466_v34  ;;  %v626_v11 = vrot.slane %v593_v52, 2 }
 0x112   :  { %v585_v5 = vadd.f32 %v1594_v55, %v494_v18  ;;  %v717_v29 = vrot.slane %v684_v56, 3  ;;  %v501_v30 = vmul.f32 %v1252_v39, %v465_v0  ;;  %v592_v1 = vmul.f32 %v1254_v23, %v465_v0 }
 0x113   :  { %v575_v33 = vadd.f32 %v535_v58, %v484_v28  ;;  %v808_v35 = vrot.slane %v775_v6, 4  ;;  %v683_v3 = vmul.f32 %v1264_v40, %v465_v0  ;;  %v446_v4 = vpop.permute.xlu2 %445  ;;  %v426_v41 = vpop.permute.xlu1 %425  ;;  %v774_v22 = vmul.f32 %v1274_v15, %v465_v0 }
 0x114   :  { %v676_v51 = vadd.f32 %v1596_v19, %v585_v5  ;;  %v534_v34 = vrot.slane %v501_v30, 1  ;;  %v479_v18 = vadd.f32 %v446_v4, %v381_v24  ;;  %v424_v52 = vpop.permute.xlu0 %423  ;;  %v483_v55 = vmul.f32 %v1262_v59, %v465_v0 }
 0x115   :  { %v666_v56 = vadd.f32 %v626_v11, %v575_v33  ;;  %v625_v28 = vrot.slane %v592_v1, 2  ;;  %v716_v6 = vrot.slane %v683_v3, 3  ;;  %v807_v53 = vrot.slane %v774_v22, 4 }
 0x116   :  { %v767_v25 = vadd.f32 %v732_v50, %v676_v51  ;;  %v536_v16 = vsel %vm533_vm1, %v534_v34, %v535_v58  ;;  %v469_v57 = vadd.f32 %v426_v41, %v1304_v54  ;;  %v1390_v3 = vmul.f32 %v1252_v39, %v479_v18 }
 0x117   :  { %v757_v5 = vadd.f32 %v717_v29, %v666_v56  ;;  %v574_v19 = vadd.f32 %v536_v16, %v483_v55  ;;  %v627_v30 = vsel %vm624_vm2, %v625_v28, %v626_v11  ;;  %v718_v24 = vsel %vm715_vm3, %v716_v6, %v717_v29 }
 0x118   :  { %v858_v4 = vadd.f32 %v823_v10, %v767_v25  ;;  %v809_v1 = vsel %vm806_vm4, %v807_v53, %v808_v35  ;;  %v1393_v0 = vmul.f32 %v1254_v23, %v479_v18  ;;  %v1396_v54 = vmul.f32 %v1262_v59, %v479_v18 }
 0x119   :  { %v848_v22 = vadd.f32 %v808_v35, %v757_v5  ;;  %v665_v58 = vadd.f32 %v627_v30, %v574_v19  ;;  %v1399_v16 = vmul.f32 %v1264_v40, %v479_v18  ;;  %v555_v53 = vrot.slane %v1390_v3, 1 }
 0x11a   :  { %876 = vst.msk [vmem:[%s1593_s3 + $0x58] sm:$0xf] %vm865_vm0, %v858_v4  ;;  %v646_v25 = vrot.slane %v1393_v0, 2  ;;  %v1408_v41 = vmul.f32 %v1274_v15, %v479_v18  ;;  %v505_v55 = vmul.f32 %v1252_v39, %v469_v57  ;;  %v487_v29 = vmul.f32 %v1262_v59, %v469_v57 }
 0x11b   :  { %866 = vst.msk [vmem:[%s1593_s3 + $0x8] sm:$0xf] %vm865_vm0, %v848_v22  ;;  %v756_v19 = vadd.f32 %v718_v24, %v665_v58  ;;  %v737_v11 = vrot.slane %v1399_v16, 3  ;;  %v596_v33 = vmul.f32 %v1254_v23, %v469_v57  ;;  %v432_v35 = vpop.permute.xlu1 %431  ;;  %v687_v34 = vmul.f32 %v1264_v40, %v469_v57 }
 0x11c   :  { %v540_v51 = vrot.slane %v505_v55, 1  ;;  %v778_v18 = vmul.f32 %v1274_v15, %v469_v57  ;;  %v468_v56 = vadd.f32 %v424_v52, %v1228_v38  ;;  %v430_v28 = vpop.permute.xlu0 %429  ;;  %v472_v30 = vadd.f32 %v432_v35, %v1307_v62 }
 0x11d   :  { %v847_v6 = vadd.f32 %v809_v1, %v756_v19  ;;  %v631_v5 = vrot.slane %v596_v33, 2  ;;  %v471_v24 = vadd.f32 %v430_v28, %v1232_v21  ;;  %v722_v22 = vrot.slane %v687_v34, 3 }
 0x11e   :  { %v542_v4 = vsel %vm533_vm1, %v540_v51, %v541_v43  ;;  %v813_v58 = vrot.slane %v778_v18, 4  ;;  %v486_v55 = vmul.f32 %v1262_v59, %v468_v56  ;;  %v504_v21 = vmul.f32 %v1252_v39, %v468_v56 }
 0x11f   :  { %864 = vst.msk [vmem:[%s1593_s3] sm:$0xff] %vm863_vm5, %v847_v6  ;;  %v578_v38 = vadd.f32 %v542_v4, %v487_v29  ;;  %v633_v57 = vsel %vm624_vm2, %v631_v5, %v632_v48  ;;  %v595_v7 = vmul.f32 %v1254_v23, %v468_v56  ;;  %v724_v43 = vsel %vm715_vm3, %v722_v22, %v723_v14 }
 0x120   :  { %v1597_v62 = vrot.slane %v1280_v36, 4  ;;  %v686_v1 = vmul.f32 %v1264_v40, %v468_v56  ;;  %v777_v19 = vmul.f32 %v1274_v15, %v468_v56  ;;  %v538_v9 = vrot.slane %v504_v21, 1 }
 0x121   :  { %v669_v29 = vadd.f32 %v633_v57, %v578_v38  ;;  %v629_v33 = vrot.slane %v595_v7, 2  ;;  %v490_v48 = vmul.f32 %v1262_v59, %v472_v30  ;;  %v508_v34 = vmul.f32 %v1252_v39, %v472_v30 }
 0x122   :  { %v815_v52 = vsel %vm806_vm4, %v813_v58, %v1597_v62  ;;  %v720_v35 = vrot.slane %v686_v1, 3  ;;  %v811_v51 = vrot.slane %v777_v19, 4  ;;  %v599_v44 = vmul.f32 %v1254_v23, %v472_v30 }
 0x123   :  { %v760_v14 = vadd.f32 %v724_v43, %v669_v29  ;;  %v1598_v36 = vrot.slane %v1287_v63, 1  ;;  %v577_v28 = vadd.f32 %v538_v9, %v486_v55  ;;  %v1599_v6 = vrot.slane %v1290_v46, 2  ;;  %v438_v29 = vpop.permute.xlu1 %437 }
 0x124   :  { %v1600_v4 = vrot.slane %v1297_v60, 3  ;;  %v1601_v58 = vrot.slane %v1300_v61, 4  ;;  %v544_v57 = vrot.slane %v508_v34, 1  ;;  %v436_v21 = vpop.permute.xlu0 %435  ;;  %v635_v43 = vrot.slane %v599_v44, 2 }
 0x125   :  { %v539_v18 = vsel %vm533_vm1, %v1598_v36, %v538_v9  ;;  %v630_v56 = vsel %vm624_vm2, %v1599_v6, %v629_v33  ;;  %v851_v63 = vadd.f32 %v815_v52, %v760_v14  ;;  %v668_v7 = vadd.f32 %v629_v33, %v577_v28 }
 0x126   :  { %v576_v5 = vadd.f32 %v539_v18, %v1324_v45  ;;  %v721_v22 = vsel %vm715_vm3, %v1600_v4, %v720_v35  ;;  %v812_v38 = vsel %vm806_vm4, %v1601_v58, %v811_v51  ;;  %v690_v55 = vmul.f32 %v1264_v40, %v472_v30 }
 0x127   :  { %v581_v62 = vadd.f32 %v544_v57, %v490_v48  ;;  %v781_v1 = vmul.f32 %v1274_v15, %v472_v30  ;;  %v489_v45 = vmul.f32 %v1262_v59, %v471_v24  ;;  %869 = vst.msk [vmem:[%s1593_s3 + $0x20] sm:$0xff] %vm863_vm5, %v851_v63  ;;  %v759_v60 = vadd.f32 %v720_v35, %v668_v7 }
 0x128   :  { %v667_v46 = vadd.f32 %v630_v56, %v576_v5  ;;  %v726_v61 = vrot.slane %v690_v55, 3  ;;  %v507_v19 = vmul.f32 %v1252_v39, %v471_v24  ;;  %v598_v52 = vmul.f32 %v1254_v23, %v471_v24 }
 0x129   :  { %v672_v33 = vadd.f32 %v635_v43, %v581_v62  ;;  %v817_v34 = vrot.slane %v781_v1, 4  ;;  %v689_v48 = vmul.f32 %v1264_v40, %v471_v24  ;;  %v850_v30 = vadd.f32 %v811_v51, %v759_v60 }
 0x12a   :  { %v758_v9 = vadd.f32 %v721_v22, %v667_v46  ;;  %v543_v44 = vrot.slane %v507_v19, 1  ;;  %v634_v14 = vrot.slane %v598_v52, 2  ;;  %v780_v36 = vmul.f32 %v1274_v15, %v471_v24 }
 0x12b   :  { %v763_v28 = vadd.f32 %v726_v61, %v672_v33  ;;  %v725_v6 = vrot.slane %v689_v48, 3  ;;  %v475_v35 = vadd.f32 %v438_v29, %v1335_v2  ;;  %868 = vst.msk [vmem:[%s1593_s3 + $0x18] sm:$0xf] %vm865_vm0, %v850_v30  ;;  %v474_v51 = vadd.f32 %v436_v21, %v1241_v27 }
 0x12c   :  { %v849_v18 = vadd.f32 %v812_v38, %v758_v9  ;;  %v545_v56 = vsel %vm533_vm1, %v543_v44, %v544_v57  ;;  %v636_v5 = vsel %vm624_vm2, %v634_v14, %v635_v43  ;;  %v816_v4 = vrot.slane %v780_v36, 4  ;;  %v442_v38 = vpop.permute.xlu0 %441  ;;  %v444_v14 = vpop.permute.xlu1 %443 }
 0x12d   :  { %v854_v24 = vadd.f32 %v817_v34, %v763_v28  ;;  %v580_v22 = vadd.f32 %v545_v56, %v489_v45  ;;  %v727_v2 = vsel %vm715_vm3, %v725_v6, %v726_v61  ;;  %v493_v58 = vmul.f32 %v1262_v59, %v475_v35 }
 0x12e   :  { %867 = vst.msk [vmem:[%s1593_s3 + $0x10] sm:$0xff] %vm863_vm5, %v849_v18  ;;  %v818_v63 = vsel %vm806_vm4, %v816_v4, %v817_v34  ;;  %v511_v57 = vmul.f32 %v1252_v39, %v475_v35  ;;  %v602_v7 = vmul.f32 %v1254_v23, %v475_v35  ;;  %v693_v27 = vmul.f32 %v1264_v40, %v475_v35 }
 0x12f   :  { %872 = vst.msk [vmem:[%s1593_s3 + $0x38] sm:$0xf] %vm865_vm0, %v854_v24  ;;  %v671_v21 = vadd.f32 %v636_v5, %v580_v22  ;;  %v784_v43 = vmul.f32 %v1274_v15, %v475_v35  ;;  %v492_v55 = vmul.f32 %v1262_v59, %v474_v51  ;;  %v510_v46 = vmul.f32 %v1252_v39, %v474_v51 }
 0x130   :  { %v549_v62 = vrot.slane %v511_v57, 1  ;;  %v640_v1 = vrot.slane %v602_v7, 2  ;;  %v731_v45 = vrot.slane %v693_v27, 3  ;;  %v601_v60 = vmul.f32 %v1254_v23, %v474_v51 }
 0x131   :  { %v762_v61 = vadd.f32 %v727_v2, %v671_v21  ;;  %v822_v19 = vrot.slane %v784_v43, 4  ;;  %v547_v52 = vrot.slane %v510_v46, 1  ;;  %v692_v29 = vmul.f32 %v1264_v40, %v474_v51 }
 0x132   :  { %v1602_v9 = vrot.slane %v1349_v42, 1  ;;  %v1603_v34 = vrot.slane %v1352_v26, 2  ;;  %v733_v30 = vsel %vm715_vm3, %v731_v45, %v732_v50  ;;  %v638_v44 = vrot.slane %v601_v60, 2 }
 0x133   :  { %v853_v36 = vadd.f32 %v818_v63, %v762_v61  ;;  %v824_v28 = vsel %vm806_vm4, %v822_v19, %v823_v10  ;;  %v1604_v42 = vrot.slane %v1312_v13, 1  ;;  %v583_v35 = vadd.f32 %v547_v52, %v492_v55 }
 0x134   :  { %v551_v33 = vsel %vm533_vm1, %v549_v62, %v1602_v9  ;;  %v642_v48 = vsel %vm624_vm2, %v640_v1, %v1603_v34  ;;  %v1605_v56 = vrot.slane %v1315_v20, 2  ;;  %v729_v50 = vrot.slane %v692_v29, 3  ;;  %v448_v4 = vpop.permute.xlu0 %447 }
 0x135   :  { %v584_v18 = vadd.f32 %v551_v33, %v493_v58  ;;  %v548_v6 = vsel %vm533_vm1, %v1604_v42, %v547_v52  ;;  %871 = vst.msk [vmem:[%s1593_s3 + $0x30] sm:$0xff] %vm863_vm5, %v853_v36  ;;  %v783_v10 = vmul.f32 %v1274_v15, %v474_v51  ;;  %v478_v13 = vadd.f32 %v444_v14, %v1342_v31 }
 0x136   :  { %v582_v26 = vadd.f32 %v548_v6, %v1339_v8  ;;  %v639_v47 = vsel %vm624_vm2, %v1605_v56, %v638_v44  ;;  %v477_v5 = vadd.f32 %v442_v38, %v1245_v12  ;;  %v674_v24 = vadd.f32 %v638_v44, %v583_v35 }
 0x137   :  { %v675_v49 = vadd.f32 %v642_v48, %v584_v18  ;;  %v1606_v20 = vrot.slane %v1318_v32, 3  ;;  %v480_v2 = vadd.f32 %v448_v4, %v1247_v17  ;;  %v820_v63 = vrot.slane %v783_v10, 4 }
 0x138   :  { %v673_v8 = vadd.f32 %v639_v47, %v582_v26  ;;  %v496_v57 = vmul.f32 %v1262_v59, %v478_v13  ;;  %v514_v7 = vmul.f32 %v1252_v39, %v478_v13  ;;  %v765_v27 = vadd.f32 %v729_v50, %v674_v24 }
 0x139   :  { %v730_v22 = vsel %vm715_vm3, %v1606_v20, %v729_v50  ;;  %v766_v58 = vadd.f32 %v733_v30, %v675_v49  ;;  %v605_v31 = vmul.f32 %v1254_v23, %v478_v13  ;;  %v696_v12 = vmul.f32 %v1264_v40, %v478_v13 }
 0x13a   :  { %v764_v51 = vadd.f32 %v730_v22, %v673_v8  ;;  %v1607_v21 = vrot.slane %v1321_v37, 4  ;;  %v553_v43 = vrot.slane %v514_v7, 1  ;;  %v787_v17 = vmul.f32 %v1274_v15, %v478_v13 }
 0x13b   :  { %v857_v38 = vadd.f32 %v824_v28, %v766_v58  ;;  %v856_v46 = vadd.f32 %v820_v63, %v765_v27  ;;  %v644_v62 = vrot.slane %v605_v31, 2  ;;  %v735_v1 = vrot.slane %v696_v12, 3 }
 0x13c   :  { %v821_v32 = vsel %vm806_vm4, %v1607_v21, %v820_v63  ;;  %v587_v45 = vadd.f32 %v553_v43, %v496_v57  ;;  %v826_v60 = vrot.slane %v787_v17, 4  ;;  %v495_v61 = vmul.f32 %v1262_v59, %v477_v5 }
 0x13d   :  { %v855_v55 = vadd.f32 %v821_v32, %v764_v51  ;;  %875 = vst.msk [vmem:[%s1593_s3 + $0x50] sm:$0xff] %vm863_vm5, %v857_v38  ;;  %v513_v37 = vmul.f32 %v1252_v39, %v477_v5  ;;  %v604_v19 = vmul.f32 %v1254_v23, %v477_v5  ;;  %v695_v52 = vmul.f32 %v1264_v40, %v477_v5 }
 0x13e   :  { %v786_v29 = vmul.f32 %v1274_v15, %v477_v5  ;;  %v498_v9 = vmul.f32 %v1262_v59, %v480_v2  ;;  %874 = vst.msk [vmem:[%s1593_s3 + $0x48] sm:$0xf] %vm865_vm0, %v856_v46  ;;  %v678_v33 = vadd.f32 %v644_v62, %v587_v45  ;;  %v516_v48 = vmul.f32 %v1252_v39, %v480_v2 }
 0x13f   :  { %873 = vst.msk [vmem:[%s1593_s3 + $0x40] sm:$0xff] %vm863_vm5, %v855_v55  ;;  %v552_v34 = vrot.slane %v513_v37, 1  ;;  %v607_v30 = vmul.f32 %v1254_v23, %v480_v2  ;;  %v643_v44 = vrot.slane %v604_v19, 2  ;;  %v734_v14 = vrot.slane %v695_v52, 3 }
 0x140   :  { %v825_v36 = vrot.slane %v786_v29, 4  ;;  %v698_v18 = vmul.f32 %v1264_v40, %v480_v2  ;;  %v769_v28 = vadd.f32 %v735_v1, %v678_v33  ;;  %v556_v59 = vrot.slane %v516_v48, 1 }
 0x141   :  { %v554_v42 = vsel %vm533_vm1, %v552_v34, %v553_v43  ;;  %v647_v6 = vrot.slane %v607_v30, 2  ;;  %v645_v35 = vsel %vm624_vm2, %v643_v44, %v644_v62  ;;  %v736_v56 = vsel %vm715_vm3, %v734_v14, %v735_v1 }
 0x142   :  { %v586_v26 = vadd.f32 %v554_v42, %v495_v61  ;;  %v827_v47 = vsel %vm806_vm4, %v825_v36, %v826_v60  ;;  %v860_v39 = vadd.f32 %v826_v60, %v769_v28  ;;  %v557_v23 = vsel %vm533_vm1, %v555_v53, %v556_v59 }
 0x143   :  { %v589_v50 = vadd.f32 %v556_v59, %v498_v9  ;;  %v648_v40 = vsel %vm624_vm2, %v646_v25, %v647_v6  ;;  %v588_v10 = vadd.f32 %v557_v23, %v1396_v54  ;;  %v738_v13 = vrot.slane %v698_v18, 3 }
 0x144   :  { %v677_v49 = vadd.f32 %v645_v35, %v586_v26  ;;  %v789_v5 = vmul.f32 %v1274_v15, %v480_v2  ;;  %v828_v4 = vrot.slane %v1408_v41, 4  ;;  %878 = vst.msk [vmem:[%s1593_s3 + $0x68] sm:$0xf] %vm865_vm0, %v860_v39 }
 0x145   :  { %v680_v3 = vadd.f32 %v647_v6, %v589_v50  ;;  %v679_v8 = vadd.f32 %v648_v40, %v588_v10  ;;  %v739_v0 = vsel %vm715_vm3, %v737_v11, %v738_v13 }
 0x146   :  { %v768_v53 = vadd.f32 %v736_v56, %v677_v49  ;;  %v829_v25 = vrot.slane %v789_v5, 4 }
 0x147   :  { %v771_v24 = vadd.f32 %v738_v13, %v680_v3  ;;  %v770_v20 = vadd.f32 %v739_v0, %v679_v8 }
 0x148   :  { %v859_v54 = vadd.f32 %v827_v47, %v768_v53  ;;  %v830_v15 = vsel %vm806_vm4, %v828_v4, %v829_v25 }
 0x149   :  { %v862_v22 = vadd.f32 %v829_v25, %v771_v24  ;;  %v861_v41 = vadd.f32 %v830_v15, %v770_v20 }
 0x14a   :  { %877 = vst.msk [vmem:[%s1593_s3 + $0x60] sm:$0xff] %vm863_vm5, %v859_v54 }
 0x14b   :  { %880 = vst.msk [vmem:[%s1593_s3 + $0x78] sm:$0xf] %vm865_vm0, %v862_v22 }
 0x14c   :  { %879 = vst.msk [vmem:[%s1593_s3 + $0x70] sm:$0xff] %vm863_vm5, %v861_v41 }
 0x14d   :  { %885 = vsyncpa [#allocation3], 1 }
 0x14e   :  { %886 = vsyncpa [#allocation4], 1 }
 0x14f   :  { %887 = vsyncpa [#allocation5], 1 }

</bundles_post_ra>
